<compile_context>
chip_gen: v5e
topology: v5e:2x2
jax: 0.10.0
libtpu: 0.0.40
codegen_flags: <defaults>
</compile_context>

<pallas_src>
import functools

import jax
import jax.numpy as jnp
from jax.experimental import pallas as pl
from jax.experimental.pallas import tpu as pltpu


def _round_up(n, m):
    return ((n + m - 1) // m) * m


def _linear_kernel(b_ref, x_ref, w_ref, o_ref):
    """o = x @ w + b.

    x_ref: (tb, W) f32 row tile (W = 128 lane-dense packed view, or raw F).
    w_ref: (W, P)  f32 weight, resident across the whole grid
           (block-diagonal replica of the weight row when packed, P = 128 // F).
    b_ref: (1, 1)  f32 bias scalar in SMEM.
    o_ref: (tb, P) f32 output tile.
    """
    acc = jnp.dot(
        x_ref[...],
        w_ref[...],
        preferred_element_type=jnp.float32,
        precision=jax.lax.Precision.HIGHEST,
    )
    o_ref[...] = (acc + b_ref[0, 0]).astype(o_ref.dtype)


def _pick_tile_rows(num_rows, row_width, target_tile_bytes):
    """Rows per grid step: large (HBM roofline), multiple of 8, >= 2 grid steps."""
    tb = max(8, (target_tile_bytes // (row_width * 4)) // 8 * 8)
    if num_rows > 8:
        # Keep at least two grid steps so a v7x megacore can shard the batch axis.
        tb = min(tb, _round_up(pl.cdiv(num_rows, 2), 8))
    if tb >= num_rows:
        tb = num_rows  # single full-array block (always a legal block shape)
    return tb


@functools.partial(
    jax.jit, static_argnames=("target_tile_bytes", "xla_small_batch_threshold")
)
def linear_regression_forward(
    x,
    weight,
    bias,
    *,
    target_tile_bytes=4 * 1024 * 1024,
    xla_small_batch_threshold=0,  # production callers: ~1024 to skip kernel overhead
):
    """Pallas equivalent of torch.nn.Linear(in_features, 1) forward.

    Args:
      x:      (B, F) float32
      weight: (1, F) float32 (PyTorch Linear layout: [out_features, in_features])
      bias:   (1,)   float32
    Returns:
      (B, 1) float32
    """
    B, F = x.shape
    x = x.astype(jnp.float32)
    w_row = weight.reshape(1, F).astype(jnp.float32)
    b_smem = bias.reshape(1, 1).astype(jnp.float32)

    if B < xla_small_batch_threshold:
        # Tiny batches: a single fused XLA op beats any launch/DMA overhead.
        return x @ w_row.T + b_smem

    # ---- layout: lane-dense packed view when F divides 128 ------------------
    pack = 128 // F if (F <= 128 and 128 % F == 0) else 1
    packed = pack > 1 and B % pack == 0 and (B // pack) >= 8
    if packed:
        rows, width = B // pack, 128
        # Free bitcast reshape of contiguous row-major data (no HBM copy).
        x2d = x.reshape(rows, width)
        # Block-diagonal weight: column j holds the weight row in rows [j*F,(j+1)*F).
        eye = jnp.eye(pack, dtype=jnp.float32)
        w2d = (eye[:, None, :] * w_row.reshape(F)[None, :, None]).reshape(width, pack)
    else:
        pack = 1
        rows, width = B, F
        x2d = x
        w2d = w_row.T  # (F, 1)

    tb = _pick_tile_rows(rows, width, target_tile_bytes)
    grid = (pl.cdiv(rows, tb),)  # ragged last tile handled by Pallas (no host pad)

    out2d = pl.pallas_call(
        _linear_kernel,
        out_shape=jax.ShapeDtypeStruct((rows, pack), jnp.float32),
        grid=grid,
        in_specs=[
            # Bias: whole (1,1) array in SMEM -- scalar read, no VMEM DMA stream.
            pl.BlockSpec(memory_space=pltpu.MemorySpace.SMEM),
            # x: one (tb, width) row tile per grid step (auto double-buffered).
            pl.BlockSpec((tb, width), lambda i: (i, 0)),
            # Weight: resident across the whole grid (constant index_map).
            pl.BlockSpec((width, pack), lambda i: (0, 0)),
        ],
        out_specs=pl.BlockSpec((tb, pack), lambda i: (i, 0)),
        compiler_params=pltpu.CompilerParams(
            dimension_semantics=("parallel",),   # megacore sharding of batch tiles
            vmem_limit_bytes=32 * 1024 * 1024,   # safe on v5e/v6e/v7x, room for 2x4 MiB
        ),
    )(b_smem, x2d, w2d)

    # Free bitcast reshape back to the PyTorch output shape.
    return out2d.reshape(B, 1)


if __name__ == "__main__":
    key = jax.random.PRNGKey(0)
    kx, kw, kb, kx2, kx3, kw3, kb3 = jax.random.split(key, 7)

    # Small shapes consistent with the original module: batch=8, in_features=32.
    B, F = 8, 32
    bound = 1.0 / (F ** 0.5)
    x = jax.random.normal(kx, (B, F), dtype=jnp.float32)
    weight = jax.random.uniform(kw, (1, F), minval=-bound, maxval=bound,
                                dtype=jnp.float32)
    bias = jax.random.uniform(kb, (1,), minval=-bound, maxval=bound,
                              dtype=jnp.float32)

    out = jax.block_until_ready(linear_regression_forward(x, weight, bias))
    ref = x @ weight.T + bias
    assert out.shape == (B, 1)
    assert jnp.allclose(out, ref, atol=1e-4, rtol=1e-4), "mismatch (small batch)"

    # Lane-dense packed path with a multi-step, ragged grid (no host padding).
    B2 = 272
    x2 = jax.random.normal(kx2, (B2, F), dtype=jnp.float32)
    out2 = jax.block_until_ready(linear_regression_forward(x2, weight, bias))
    ref2 = x2 @ weight.T + bias
    assert out2.shape == (B2, 1)
    assert jnp.allclose(out2, ref2, atol=1e-4, rtol=1e-4), "mismatch (packed batch)"

    # Fallback path: in_features that does not divide 128 and a ragged batch.
    B3, F3 = 137, 93
    bound3 = 1.0 / (F3 ** 0.5)
    x3 = jax.random.normal(kx3, (B3, F3), dtype=jnp.float32)
    w3 = jax.random.uniform(kw3, (1, F3), minval=-bound3, maxval=bound3,
                            dtype=jnp.float32)
    bias3 = jax.random.uniform(kb3, (1,), minval=-bound3, maxval=bound3,
                               dtype=jnp.float32)
    out3 = jax.block_until_ready(linear_regression_forward(x3, w3, bias3))
    ref3 = x3 @ w3.T + bias3
    assert out3.shape == (B3, 1)
    assert jnp.allclose(out3, ref3, atol=1e-4, rtol=1e-4), "mismatch (fallback path)"

    print("KERNEL_OK")
</pallas_src>

<mosaic_0001>
module attributes {stable_mosaic.version = 11 : i64} {
  func.func @_linear_kernel(%arg0: i32, %arg1: memref<1x1xf32, #tpu.memory_space<smem>>, %arg2: memref<8x32xf32, #tpu.memory_space<vmem>>, %arg3: memref<32x1xf32, #tpu.memory_space<vmem>>, %arg4: memref<8x1xf32, #tpu.memory_space<vmem>>) attributes {dimension_semantics = [#tpu.dimension_semantics<parallel>], iteration_bounds = array<i64: 1>, scalar_prefetch = 0 : i64, scratch_operands = 0 : i64, tpu.core_type = #tpu.core_type<tc>, window_params = [{transform_indices = @transform_0, window_bounds = array<i64: 1, 1>}, {transform_indices = @transform_1, window_bounds = array<i64: 8, 32>}, {pipeline_mode = #tpu.pipeline_mode<synchronous>, transform_indices = @transform_2, window_bounds = array<i64: 32, 1>}, {transform_indices = @transform_3, window_bounds = array<i64: 8, 1>}]} {
    %c0 = arith.constant 0 : index
    %c0_0 = arith.constant 0 : index
    %0 = vector.load %arg2[%c0, %c0_0] : memref<8x32xf32, #tpu.memory_space<vmem>>, vector<8x32xf32>
    %c0_1 = arith.constant 0 : index
    %c0_2 = arith.constant 0 : index
    %1 = vector.load %arg3[%c0_1, %c0_2] : memref<32x1xf32, #tpu.memory_space<vmem>>, vector<32x1xf32>
    %cst = arith.constant dense<0.000000e+00> : vector<8x1xf32>
    %2 = tpu.matmul %0, %1, %cst {dimension_numbers = #tpu.dot_dimension_numbers<[1], [0], [0], [1], [0, 0, 1, 1], [], []>, precision = #tpu.contract_precision<fp32>} : vector<8x32xf32>, vector<32x1xf32>, vector<8x1xf32> -> vector<8x1xf32>
    %c0_3 = arith.constant 0 : index
    %c0_4 = arith.constant 0 : index
    %3 = memref.load %arg1[%c0_3, %c0_4] : memref<1x1xf32, #tpu.memory_space<smem>>
    %4 = vector.broadcast %3 : f32 to vector<8x1xf32>
    %5 = arith.addf %2, %4 : vector<8x1xf32>
    %c0_5 = arith.constant 0 : index
    %c0_6 = arith.constant 0 : index
    %6 = vector.load %arg4[%c0_5, %c0_6] : memref<8x1xf32, #tpu.memory_space<vmem>>, vector<8x1xf32>
    tpu.vector_store %arg4[%c0_5, %c0_6], %5 {strides = array<i32>} : memref<8x1xf32, #tpu.memory_space<vmem>>, vector<8x1xf32>,
    return
  }
  func.func @transform_0(%arg0: i32) -> (i32, i32) {
    %c0_i32 = arith.constant 0 : i32
    %c0_i32_0 = arith.constant 0 : i32
    %c0_i32_1 = arith.constant 0 : i32
    return %c0_i32, %c0_i32_0 : i32, i32
  }
  func.func @transform_1(%arg0: i32) -> (i32, i32) {
    %c0_i32 = arith.constant 0 : i32
    %c0_i32_0 = arith.constant 0 : i32
    return %arg0, %c0_i32 : i32, i32
  }
  func.func @transform_2(%arg0: i32) -> (i32, i32) {
    %c0_i32 = arith.constant 0 : i32
    %c0_i32_0 = arith.constant 0 : i32
    %c0_i32_1 = arith.constant 0 : i32
    return %c0_i32, %c0_i32_0 : i32, i32
  }
  func.func @transform_3(%arg0: i32) -> (i32, i32) {
    %c0_i32 = arith.constant 0 : i32
    %c0_i32_0 = arith.constant 0 : i32
    return %arg0, %c0_i32 : i32, i32
  }
}

</mosaic_0001>

<bundles_post_ra>
// kernel: linear_regression_forward.1
= control target key start
LH: loop header
LB: loop body
LE: loop exit
PB: predicated region body
PF: predicated region fallthrough
CT: control target
= control target key end

     0   :  { %vm22_vm0 = vcmask 261120   ;;  %vm211_vm1 = vcmask 7168   ;;  %s258_s2 = inlined_call_operand.vmem [shape: f32[32,1], index: 2, kind: input, shape index: {}]   ;;  %s259_s1 = inlined_call_operand.vmem [shape: f32[8,32], index: 1, kind: input, shape index: {}]   ;;  %s260_s0 = inlined_call_operand.<no memory space> [shape: f32[1,1], index: 0, kind: input, shape index: {}]   ;;  %s261_s3 = inlined_call_operand.vmem [shape: f32[8,1], index: 3, kind: output, shape index: {}]  }
   0x1   :  { %v19_v0 = vld [vmem:[%s258_s2 + $0x18] sm:$0xff]  ;;  %v18_v1 = vld [vmem:[%s258_s2 + $0x10] sm:$0xff]  ;;  %v17_v2 = vld [vmem:[%s258_s2 + $0x8] sm:$0xff]  ;;  %v21_v31 = vstv %s260_s0 }
   0x2   :  { %v38_v3 = vand.u32 4294901760, %v19_v0  ;;  %v40_v4 = vand.u32 4294901760, %v18_v1  ;;  %v42_v5 = vand.u32 4294901760, %v17_v2  ;;  %v16_v6 = vld [vmem:[%s258_s2] sm:$0xff] }
   0x3   :  { %v15_v7 = vld [vmem:[%s259_s1] sm:$0xff]  ;;  %v44_v8 = vand.u32 4294901760, %v16_v6 }
   0x4   :  { %v24_v9 = vsel %vm22_vm0, %v15_v7, 0  ;;  %v68_v10 = vsub.f32 %v19_v0, %v38_v3  ;;  %39 = vmatpush.msra.mxu0 %v38_v3  ;;  %v74_v11 = vsub.f32 %v18_v1, %v40_v4  ;;  %139 = vmatpush.msra.mxu3 %v38_v3  ;;  %v80_v12 = vsub.f32 %v17_v2, %v42_v5 }
   0x5   :  { %v46_v13 = vand.u32 4294901760, %v24_v9  ;;  %v86_v14 = vsub.f32 %v16_v6, %v44_v8 }
   0x6   :  { %110 = vmatpush.msra.mxu2 %v68_v10  ;;  %41 = vmatpush.msra.mxu0 %v40_v4  ;;  %v69_v15 = vand.u32 4294901760, %v68_v10  ;;  %v75_v16 = vand.u32 4294901760, %v74_v11  ;;  %v81_v18 = vand.u32 4294901760, %v80_v12 }
   0x7   :  { %v47_v17 = vsub.f32 %v24_v9, %v46_v13  ;;  %141 = vmatpush.msra.mxu3 %v40_v4  ;;  %v87_v19 = vand.u32 4294901760, %v86_v14 }
   0x8   :  { %113 = vmatpush.msra.mxu2 %v74_v11  ;;  %v70_v20 = vsub.f32 %v68_v10, %v69_v15  ;;  %43 = vmatpush.msra.mxu0 %v42_v5  ;;  %v76_v21 = vsub.f32 %v74_v11, %v75_v16  ;;  %v82_v22 = vsub.f32 %v80_v12, %v81_v18 }
   0x9   :  { %v48_v23 = vand.u32 4294901760, %v47_v17  ;;  %143 = vmatpush.msra.mxu3 %v42_v5  ;;  %v88_v27 = vsub.f32 %v86_v14, %v87_v19 }
   0xa   :  { %v71_v24 = vand.u32 4294901760, %v70_v20  ;;  %116 = vmatpush.msra.mxu2 %v80_v12  ;;  %v77_v25 = vand.u32 4294901760, %v76_v21  ;;  %45 = vmatpush.msra.mxu0 %v44_v8  ;;  %v83_v28 = vand.u32 4294901760, %v82_v22 }
   0xb   :  { %v49_v26 = vsub.f32 %v47_v17, %v48_v23  ;;  %145 = vmatpush.msra.mxu3 %v44_v8  ;;  %v89_v30 = vand.u32 4294901760, %v88_v27 }
   0xc   :  { %168 = vmatpush.msrb.mxu0 %v69_v15  ;;  %72 = vmatpush.msra.mxu1 %v71_v24 }
   0xd   :  { %119 = vmatpush.msra.mxu2 %v86_v14  ;;  %v50_v29 = vand.u32 4294901760, %v49_v26  ;;  %149 = vmatmul.f32.vlgmr.msra.gmra.mxu3 %v48_v23 }
   0xe   :  { %122 = vmatmul.f32.vlgmr.msra.gmra.mxu2 %v47_v17  ;;  %78 = vmatpush.msra.mxu1 %v77_v25 }
   0xf   :  { %51 = vmatmul.f32.vlgmr.msra.gmra.mxu0 %v50_v29 }
  0x10   :  { %172 = vmatpush.msrb.mxu0 %v75_v16  ;;  %84 = vmatpush.msra.mxu1 %v83_v28 }
  0x12   :  { %176 = vmatpush.msrb.mxu0 %v81_v18  ;;  %90 = vmatpush.msra.mxu1 %v89_v30 }
  0x13   :  { %92 = vmatmul.f32.vlgmr.msra.gmra.mxu1 %v46_v13 }
  0x14   :  { %180 = vmatpush.msrb.mxu0 %v87_v19  ;;  %199 = vmatpush.msrb.mxu1 %v38_v3 }
  0x16   :  { %201 = vmatpush.msrb.mxu1 %v40_v4 }
  0x17   :  { %182 = vmatmul.f32.vlgmr.msrb.gmra.mxu0 %v46_v13 }
  0x18   :  { %203 = vmatpush.msrb.mxu1 %v42_v5 }
  0x1a   :  { %205 = vmatpush.msrb.mxu1 %v44_v8 }
  0x1b   :  { %207 = vmatmul.f32.vlgmr.msrb.gmra.mxu1 %v46_v13 }
  0x8c   :  { %v52_v32 = vpop.f32.mrf.mxu0 }
  0x8d   :  { %v53_v33 = vadd.f32 %v52_v32, %v21_v31 }
  0x90   :  { %v93_v34 = vpop.f32.mrf.mxu1  ;;  %v150_v37 = vpop.f32.mrf.mxu3 }
  0x91   :  { %v123_v35 = vpop.f32.mrf.mxu2  ;;  %v94_v36 = vadd.f32 %v93_v34, %v53_v33 }
  0x93   :  { %v124_v38 = vadd.f32 %v123_v35, %v94_v36 }
  0x94   :  { %v183_v39 = vpop.f32.mrf.mxu0 }
  0x95   :  { %v151_v40 = vadd.f32 %v150_v37, %v124_v38 }
  0x97   :  { %v184_v41 = vadd.f32 %v183_v39, %v151_v40 }
  0x98   :  { %v208_v42 = vpop.f32.mrf.mxu1 }
  0x99   :  { %v209_v43 = vadd.f32 %v208_v42, %v184_v41 }
  0x9b   :  { %212 = vst.msk [vmem:[%s261_s3] sm:$0xff] %vm211_vm1, %v209_v43 }

</bundles_post_ra>
